<compile_context>
chip_gen: v7x
topology: tpu7x:2x2x1
jax: 0.10.0
libtpu: 0.0.40
codegen_flags: <defaults>
</compile_context>

<pallas_src>
import math

import jax
import jax.numpy as jnp
from jax.experimental import pallas as pl
from jax.experimental.pallas import tpu as pltpu


# ---------------------------------------------------------------------------
# Kernel
# ---------------------------------------------------------------------------
def _attachment_dot_kernel(x_ref, w4i_ref, bdot_ref,
                           w1_ref, b1_ref, w23_ref, b23_ref,
                           out_ref):
    bpb, P, FR = x_ref.shape          # FR = 4R : [a0_type | a0_id | a1_type | a1_id]
    R = w23_ref.shape[-1]
    M = bpb * P

    # Stack (batches_in_block, pairs) into one M dimension for the matmuls.
    x = x_ref[...].reshape(M, FR)                                        # (M, 4R)

    # position_encoder layer 0 on BOTH atoms at once (block-diagonal w1d):
    #   [x0 | x1] @ [[w1,0],[0,w1]] = [x0@w1 | x1@w1]  -> f32 accumulate -> ReLU
    h = jnp.dot(x, w1_ref[...], preferred_element_type=jnp.float32) + b1_ref[...]
    h = jnp.maximum(h, 0.0)                                              # (M, 2R) f32

    # position_encoder layer 3 + logit_MLP layer 0 folded into one Linear
    # (w23 = blockdiag(w2) @ w3, b23 = [b2|b2] @ w3 + b3), then ReLU.
    h2 = jnp.dot(h.astype(w23_ref.dtype), w23_ref[...],
                 preferred_element_type=jnp.float32) + b23_ref[...]
    h2 = jnp.maximum(h2, 0.0)                                            # (M, R)  f32

    # logit_MLP layer 3 folded with the `inputs` dot (precomputed in wrapper):
    #   logits[b, p] = h2[b, p, :] . (w4 @ inp_b)  +  b4 . inp_b
    h3 = h2.reshape(bpb, P, R)
    logits = jnp.sum(h3 * w4i_ref[...][:, None, :], axis=-1) + bdot_ref[...]

    # Lane-dense store: all bpb*P logits of this block live on the lane axis.
    out_ref[...] = logits.reshape(1, 1, M)


# ---------------------------------------------------------------------------
# Block / VMEM heuristics
# ---------------------------------------------------------------------------
def _vmem_budgets():
    """(vmem_limit_bytes, x-block byte budget), tuned per TPU generation."""
    kind = ""
    try:
        kind = jax.devices()[0].device_kind.lower()
    except Exception:
        pass
    if "v7" in kind:                       # 64 MiB physical VMEM per TensorCore
        return 40 * 1024 * 1024, 12 * 1024 * 1024
    if "v5" in kind or "v6" in kind:       # 128 MiB physical VMEM
        return 96 * 1024 * 1024, 24 * 1024 * 1024
    return 48 * 1024 * 1024, 12 * 1024 * 1024   # unknown chip: stay conservative


def _choose_bpb(B, P, per_row_bytes, budget_bytes):
    """Number of batches stacked into each grid block.

    Targets M = bpb*P ~ 512-1024 MXU rows, keeps bpb a multiple of 8 and
    bpb*P a multiple of 128 (lane-dense output, aligned sublane blocks),
    caps the block by the per-generation VMEM budget, and keeps >= 2 grid
    blocks (v7x megacore) only when each shard still has >= 256 rows.
    """
    step = 128 // math.gcd(P, 128)                 # keeps bpb*P % 128 == 0
    step = step * 8 // math.gcd(step, 8)           # ... and bpb % 8 == 0
    rup = lambda v: -(-v // step) * step

    rows_cap = max(step * P, budget_bytes // max(per_row_bytes, 1))
    bpb_cap = max(step, (rows_cap // P) // step * step)

    bpb = min(rup(-(-1024 // P)), bpb_cap)         # ~1024 rows per MXU push
    bpb = min(bpb, rup(B))                         # one padded block covers small B
    if B * P >= 512:                               # split across 2 TCs only if worth it
        half = rup(-(-B // 2))
        if half * P >= 256:
            bpb = min(bpb, half)
    return max(step, bpb)


# ---------------------------------------------------------------------------
# Wrapper
# ---------------------------------------------------------------------------
def attachment_predictor_dot(atom_rep_pairs, inputs, params,
                             compute_dtype=jnp.bfloat16):
    """AttachmentPredictor.forward (method='dot', eval mode).

    atom_rep_pairs: (B, P, 2, 2, R) f32;  inputs: (B, L) f32  ->  logits (B, P) f32.
    """
    B, P, K, two, R = atom_rep_pairs.shape
    assert K == 2 and two == 2
    w1, b1, w2, b2, w3, b3, w4, b4 = params
    FR = 4 * R

    # ---- tiny one-time weight algebra (XLA, outside the kernel) ------------
    z1 = jnp.zeros_like(w1)                                               # (2R, R)
    w1d = jnp.concatenate([jnp.concatenate([w1, z1], axis=1),
                           jnp.concatenate([z1, w1], axis=1)], axis=0)    # (4R, 2R)
    b1d = jnp.concatenate([b1, b1], axis=-1)                              # (1, 2R)
    z2 = jnp.zeros_like(w2)                                               # (R, R)
    w2d = jnp.concatenate([jnp.concatenate([w2, z2], axis=1),
                           jnp.concatenate([z2, w2], axis=1)], axis=0)    # (2R, 2R)
    b2d = jnp.concatenate([b2, b2], axis=-1)                              # (1, 2R)
    w23 = w2d @ w3                                                        # (2R, R)
    b23 = b2d @ w3 + b3                                                   # (1, R)
    # Fold `inputs` into the last Linear:  logits = h2 @ (w4 @ inp) + b4 . inp
    w4_inp = (inputs @ w4.T).astype(jnp.float32)                          # (B, R)
    bias_dot = jnp.sum(inputs * b4, axis=-1, keepdims=True)               # (B, 1)

    # ---- block / grid selection ---------------------------------------------
    x_bytes = jnp.dtype(compute_dtype).itemsize
    per_row = 2 * FR * x_bytes + 12 * R + 8   # 2x-buffered x row + f32 intermediates
    vmem_limit, budget = _vmem_budgets()
    bpb = _choose_bpb(B, P, per_row, budget)
    num_blocks = pl.cdiv(B, bpb)
    B_pad = num_blocks * bpb

    x = atom_rep_pairs.reshape(B, P, FR).astype(compute_dtype)
    if B_pad != B:
        pad = B_pad - B
        x = jnp.pad(x, ((0, pad), (0, 0), (0, 0)))
        w4_inp = jnp.pad(w4_inp, ((0, pad), (0, 0)))
        bias_dot = jnp.pad(bias_dot, ((0, pad), (0, 0)))

    w1d = w1d.astype(compute_dtype)
    w23 = w23.astype(compute_dtype)
    b1d = b1d.astype(jnp.float32)
    b23 = b23.astype(jnp.float32)

    def full_spec(a):
        nd = a.ndim
        # TODO(synk): pipeline_mode=pl.Buffered(1) would halve the (already tiny)
        #             resident-weight VMEM; left at default buffering for safety.
        return pl.BlockSpec(a.shape, lambda i, _n=nd: (0,) * _n)

    out = pl.pallas_call(
        _attachment_dot_kernel,
        out_shape=jax.ShapeDtypeStruct((num_blocks, 1, bpb * P), jnp.float32),
        grid=(num_blocks,),
        in_specs=[
            pl.BlockSpec((bpb, P, FR), lambda i: (i, 0, 0)),   # atom pair reps
            pl.BlockSpec((bpb, R), lambda i: (i, 0)),          # w4 @ inputs  (per batch)
            pl.BlockSpec((bpb, 1), lambda i: (i, 0)),          # b4 . inputs  (per batch)
            full_spec(w1d), full_spec(b1d),
            full_spec(w23), full_spec(b23),
        ],
        out_specs=pl.BlockSpec((1, 1, bpb * P), lambda i: (i, 0, 0)),
        compiler_params=pltpu.CompilerParams(
            dimension_semantics=("parallel",),
            vmem_limit_bytes=vmem_limit,
        ),
    )(x, w4_inp, bias_dot, w1d, b1d, w23, b23)

    return out.reshape(B_pad, P)[:B]


# ---------------------------------------------------------------------------
# Params + pure-JAX reference (mirrors the PyTorch module, eval mode)
# ---------------------------------------------------------------------------
def init_params(key, node_rep_size, latent_size):
    """Deterministic PyTorch-style Linear init; weights stored as (in, out)."""
    def linear(k, fan_in, fan_out):
        kw, kb = jax.random.split(k)
        bound = 1.0 / (fan_in ** 0.5)
        w = jax.random.uniform(kw, (fan_in, fan_out), jnp.float32, -bound, bound)
        b = jax.random.uniform(kb, (1, fan_out), jnp.float32, -bound, bound)
        return w, b

    R, L = node_rep_size, latent_size
    k1, k2, k3, k4 = jax.random.split(key, 4)
    w1, b1 = linear(k1, 2 * R, R)   # position_encoder layer 0
    w2, b2 = linear(k2, R, R)       # position_encoder layer 3
    w3, b3 = linear(k3, 2 * R, R)   # logit_MLP layer 0
    w4, b4 = linear(k4, R, L)       # logit_MLP layer 3
    return (w1, b1, w2, b2, w3, b3, w4, b4)


def reference(atom_rep_pairs, inputs, params):
    """Pure-JAX replica of the PyTorch forward (method='dot', eval mode)."""
    w1, b1, w2, b2, w3, b3, w4, b4 = params
    B, P, K, _, R = atom_rep_pairs.shape
    x = atom_rep_pairs.reshape(B, P, K, 2 * R)
    h = jnp.maximum(x @ w1 + b1[0], 0.0)
    pe = h @ w2 + b2[0]
    pairs = pe.reshape(B, P, 2 * R)
    h2 = jnp.maximum(pairs @ w3 + b3[0], 0.0)
    u = h2 @ w4 + b4[0]                       # (B, P, L)
    return jnp.einsum("bpl,bl->bp", u, inputs)


if __name__ == "__main__":
    B, P = 2, 8                 # batch, attachment pairs
    node_rep_size = 32          # R  (4R = 128 -> lane-dense input rows)
    latent_size = 16            # L  (inputs dim must equal latent_size for 'dot')

    key = jax.random.PRNGKey(0)
    k_x, k_i, k_p = jax.random.split(key, 3)
    atom_rep_pairs = jax.random.normal(k_x, (B, P, 2, 2, node_rep_size), jnp.float32)
    inputs = jax.random.normal(k_i, (B, latent_size), jnp.float32)
    params = init_params(k_p, node_rep_size, latent_size)

    ref = reference(atom_rep_pairs, inputs, params)

    # fp32 path: validates the algebraic restructuring exactly.
    out_f32 = attachment_predictor_dot(atom_rep_pairs, inputs, params,
                                       compute_dtype=jnp.float32)
    jax.block_until_ready(out_f32)
    assert out_f32.shape == (B, P), out_f32.shape
    assert jnp.allclose(out_f32, ref, atol=1e-4, rtol=1e-4), (
        float(jnp.max(jnp.abs(out_f32 - ref))))

    # bf16 MXU path (default): loose tolerance due to bf16 operands.
    out_bf16 = attachment_predictor_dot(atom_rep_pairs, inputs, params)
    jax.block_until_ready(out_bf16)
    assert out_bf16.shape == (B, P), out_bf16.shape
    rel = float(jnp.linalg.norm(out_bf16 - ref) / (jnp.linalg.norm(ref) + 1e-8))
    assert rel < 5e-2, rel

    print("KERNEL_OK")
</pallas_src>

<mosaic_0001>
module attributes {stable_mosaic.version = 11 : i64} {
  func.func @_attachment_dot_kernel(%arg0: i32, %arg1: memref<16x8x128xf32, #tpu.memory_space<vmem>>, %arg2: memref<16x32xf32, #tpu.memory_space<vmem>>, %arg3: memref<16x1xf32, #tpu.memory_space<vmem>>, %arg4: memref<128x64xf32, #tpu.memory_space<vmem>>, %arg5: memref<1x64xf32, #tpu.memory_space<vmem>>, %arg6: memref<64x32xf32, #tpu.memory_space<vmem>>, %arg7: memref<1x32xf32, #tpu.memory_space<vmem>>, %arg8: memref<1x1x128xf32, #tpu.memory_space<vmem>>) attributes {dimension_semantics = [#tpu.dimension_semantics<parallel>], iteration_bounds = array<i64: 1>, scalar_prefetch = 0 : i64, scratch_operands = 0 : i64, tpu.core_type = #tpu.core_type<tc>, window_params = [{transform_indices = @transform_0, window_bounds = array<i64: 16, 8, 128>}, {transform_indices = @transform_1, window_bounds = array<i64: 16, 32>}, {transform_indices = @transform_2, window_bounds = array<i64: 16, 1>}, {pipeline_mode = #tpu.pipeline_mode<synchronous>, transform_indices = @transform_3, window_bounds = array<i64: 128, 64>}, {pipeline_mode = #tpu.pipeline_mode<synchronous>, transform_indices = @transform_4, window_bounds = array<i64: 1, 64>}, {pipeline_mode = #tpu.pipeline_mode<synchronous>, transform_indices = @transform_5, window_bounds = array<i64: 64, 32>}, {pipeline_mode = #tpu.pipeline_mode<synchronous>, transform_indices = @transform_6, window_bounds = array<i64: 1, 32>}, {transform_indices = @transform_7, window_bounds = array<i64: 1, 1, 128>}]} {
    %c0 = arith.constant 0 : index
    %c0_0 = arith.constant 0 : index
    %c0_1 = arith.constant 0 : index
    %0 = vector.load %arg1[%c0, %c0_0, %c0_1] : memref<16x8x128xf32, #tpu.memory_space<vmem>>, vector<16x8x128xf32>
    %1 = vector.shape_cast %0 : vector<16x8x128xf32> to vector<128x128xf32>
    %c0_2 = arith.constant 0 : index
    %c0_3 = arith.constant 0 : index
    %2 = vector.load %arg4[%c0_2, %c0_3] : memref<128x64xf32, #tpu.memory_space<vmem>>, vector<128x64xf32>
    %cst = arith.constant dense<0.000000e+00> : vector<128x64xf32>
    %3 = tpu.matmul %1, %2, %cst {dimension_numbers = #tpu.dot_dimension_numbers<[1], [0], [0], [1], [0, 0, 1, 1], [], []>} : vector<128x128xf32>, vector<128x64xf32>, vector<128x64xf32> -> vector<128x64xf32>
    %c0_4 = arith.constant 0 : index
    %c0_5 = arith.constant 0 : index
    %4 = vector.load %arg5[%c0_4, %c0_5] : memref<1x64xf32, #tpu.memory_space<vmem>>, vector<1x64xf32>
    %5 = vector.broadcast %4 : vector<1x64xf32> to vector<128x64xf32>
    %6 = arith.addf %3, %5 : vector<128x64xf32>
    %cst_6 = arith.constant 0.000000e+00 : f32
    %7 = vector.broadcast %cst_6 : f32 to vector<128x64xf32>
    %8 = arith.maximumf %6, %7 : vector<128x64xf32>
    %c0_7 = arith.constant 0 : index
    %c0_8 = arith.constant 0 : index
    %9 = vector.load %arg6[%c0_7, %c0_8] : memref<64x32xf32, #tpu.memory_space<vmem>>, vector<64x32xf32>
    %cst_9 = arith.constant dense<0.000000e+00> : vector<128x32xf32>
    %10 = tpu.matmul %8, %9, %cst_9 {dimension_numbers = #tpu.dot_dimension_numbers<[1], [0], [0], [1], [0, 0, 1, 1], [], []>} : vector<128x64xf32>, vector<64x32xf32>, vector<128x32xf32> -> vector<128x32xf32>
    %c0_10 = arith.constant 0 : index
    %c0_11 = arith.constant 0 : index
    %11 = vector.load %arg7[%c0_10, %c0_11] : memref<1x32xf32, #tpu.memory_space<vmem>>, vector<1x32xf32>
    %12 = vector.broadcast %11 : vector<1x32xf32> to vector<128x32xf32>
    %13 = arith.addf %10, %12 : vector<128x32xf32>
    %cst_12 = arith.constant 0.000000e+00 : f32
    %14 = vector.broadcast %cst_12 : f32 to vector<128x32xf32>
    %15 = arith.maximumf %13, %14 : vector<128x32xf32>
    %16 = vector.shape_cast %15 : vector<128x32xf32> to vector<16x8x32xf32>
    %c0_13 = arith.constant 0 : index
    %c0_14 = arith.constant 0 : index
    %17 = vector.load %arg2[%c0_13, %c0_14] : memref<16x32xf32, #tpu.memory_space<vmem>>, vector<16x32xf32>
    %18 = vector.shape_cast %17 : vector<16x32xf32> to vector<16x1x32xf32>
    %19 = vector.broadcast %18 : vector<16x1x32xf32> to vector<16x8x32xf32>
    %20 = arith.mulf %16, %19 : vector<16x8x32xf32>
    %cst_15 = arith.constant dense<0.000000e+00> : vector<16x8xf32>
    %21 = vector.multi_reduction <add>, %20, %cst_15 [2] : vector<16x8x32xf32> to vector<16x8xf32>
    %c0_16 = arith.constant 0 : index
    %c0_17 = arith.constant 0 : index
    %22 = vector.load %arg3[%c0_16, %c0_17] : memref<16x1xf32, #tpu.memory_space<vmem>>, vector<16x1xf32>
    %23 = vector.broadcast %22 : vector<16x1xf32> to vector<16x8xf32>
    %24 = arith.addf %21, %23 : vector<16x8xf32>
    %25 = vector.shape_cast %24 : vector<16x8xf32> to vector<1x1x128xf32>
    %c0_18 = arith.constant 0 : index
    %c0_19 = arith.constant 0 : index
    %c0_20 = arith.constant 0 : index
    %26 = vector.load %arg8[%c0_18, %c0_19, %c0_20] : memref<1x1x128xf32, #tpu.memory_space<vmem>>, vector<1x1x128xf32>
    tpu.vector_store %arg8[%c0_18, %c0_19, %c0_20], %25 {strides = array<i32>} : memref<1x1x128xf32, #tpu.memory_space<vmem>>, vector<1x1x128xf32>,
    return
  }
  func.func @transform_0(%arg0: i32) -> (i32, i32, i32) {
    %c0_i32 = arith.constant 0 : i32
    %c0_i32_0 = arith.constant 0 : i32
    %c0_i32_1 = arith.constant 0 : i32
    return %arg0, %c0_i32, %c0_i32_0 : i32, i32, i32
  }
  func.func @transform_1(%arg0: i32) -> (i32, i32) {
    %c0_i32 = arith.constant 0 : i32
    %c0_i32_0 = arith.constant 0 : i32
    return %arg0, %c0_i32 : i32, i32
  }
  func.func @transform_2(%arg0: i32) -> (i32, i32) {
    %c0_i32 = arith.constant 0 : i32
    %c0_i32_0 = arith.constant 0 : i32
    return %arg0, %c0_i32 : i32, i32
  }
  func.func @transform_3(%arg0: i32) -> (i32, i32) {
    %c0_i32 = arith.constant 0 : i32
    %c0_i32_0 = arith.constant 0 : i32
    %c0_i32_1 = arith.constant 0 : i32
    return %c0_i32, %c0_i32_0 : i32, i32
  }
  func.func @transform_4(%arg0: i32) -> (i32, i32) {
    %c0_i32 = arith.constant 0 : i32
    %c0_i32_0 = arith.constant 0 : i32
    %c0_i32_1 = arith.constant 0 : i32
    return %c0_i32, %c0_i32_0 : i32, i32
  }
  func.func @transform_5(%arg0: i32) -> (i32, i32) {
    %c0_i32 = arith.constant 0 : i32
    %c0_i32_0 = arith.constant 0 : i32
    %c0_i32_1 = arith.constant 0 : i32
    return %c0_i32, %c0_i32_0 : i32, i32
  }
  func.func @transform_6(%arg0: i32) -> (i32, i32) {
    %c0_i32 = arith.constant 0 : i32
    %c0_i32_0 = arith.constant 0 : i32
    %c0_i32_1 = arith.constant 0 : i32
    return %c0_i32, %c0_i32_0 : i32, i32
  }
  func.func @transform_7(%arg0: i32) -> (i32, i32, i32) {
    %c0_i32 = arith.constant 0 : i32
    %c0_i32_0 = arith.constant 0 : i32
    %c0_i32_1 = arith.constant 0 : i32
    return %arg0, %c0_i32, %c0_i32_0 : i32, i32, i32
  }
}

</mosaic_0001>

<bundles_post_ra>
// kernel: tpu_custom_call.1
= control target key start
LH: loop header
LB: loop body
LE: loop exit
PB: predicated region body
PF: predicated region fallthrough
CT: control target
= control target key end

     0   :  { %s1569_s0 = inlined_call_operand.vmem [shape: f32[16,8,128], index: 0, kind: input, shape index: {}]   ;;  %s1570_s1 = inlined_call_operand.vmem [shape: f32[16,32], index: 1, kind: input, shape index: {}]   ;;  %s1571_s2 = inlined_call_operand.vmem [shape: f32[16,1], index: 2, kind: input, shape index: {}]   ;;  %s1572_s3 = inlined_call_operand.vmem [shape: f32[128,64], index: 3, kind: input, shape index: {}]   ;;  %s1573_s4 = inlined_call_operand.vmem [shape: f32[1,64], index: 4, kind: input, shape index: {}]   ;;  %s1574_s5 = inlined_call_operand.vmem [shape: f32[64,32], index: 5, kind: input, shape index: {}]   ;;  %s1575_s6 = inlined_call_operand.vmem [shape: f32[1,32], index: 6, kind: input, shape index: {}]   ;;  %s1576_s7 = inlined_call_operand.hbm [shape: f32[1,1,128], index: 7, kind: output, shape index: {}]  }
   0x1   :  { %v43_v0 = vld [vmem:[%s1572_s3] sm:$0xff]  ;;  %v44_v1 = vld [vmem:[%s1572_s3 + $0x8] sm:$0xff]  ;;  %v45_v2 = vld [vmem:[%s1572_s3 + $0x10] sm:$0xff] }
   0x2   :  { %v1166_v3 = vpack.c.bf16 %v44_v1, %v43_v0  ;;  %v46_v4 = vld [vmem:[%s1572_s3 + $0x18] sm:$0xff]  ;;  %v47_v6 = vld [vmem:[%s1572_s3 + $0x20] sm:$0xff]  ;;  %v48_v7 = vld [vmem:[%s1572_s3 + $0x28] sm:$0xff] }
   0x3   :  { %v1170_v5 = vpack.c.bf16 %v46_v4, %v45_v2  ;;  %v1174_v8 = vpack.c.bf16 %v48_v7, %v47_v6  ;;  %v27_v9 = vld [vmem:[%s1569_s0] sm:$0xff]  ;;  %v49_v10 = vld [vmem:[%s1572_s3 + $0x30] sm:$0xff]  ;;  %v50_v11 = vld [vmem:[%s1572_s3 + $0x38] sm:$0xff] }
   0x4   :  { %1167 = vmatprep.subr.bf16.mxu0 %v1166_v3  ;;  %1102 = vmatprep.mubr.f32.mxu0 %v27_v9  ;;  %v1178_v12 = vpack.c.bf16 %v50_v11, %v49_v10  ;;  %v51_v13 = vld [vmem:[%s1572_s3 + $0x40] sm:$0xff]  ;;  %v52_v14 = vld [vmem:[%s1572_s3 + $0x48] sm:$0xff]  ;;  %v229_v17 = vld [vmem:[%s1574_s5 + $0x10] sm:$0xff] }
   0x5   :  { %1169 = vmatpush3.bf16.msra.mxu0 %v1166_v3  ;;  %v227_v15 = vld [vmem:[%s1574_s5] sm:$0xff]  ;;  %v228_v16 = vld [vmem:[%s1574_s5 + $0x8] sm:$0xff]  ;;  %v230_v18 = vld [vmem:[%s1574_s5 + $0x18] sm:$0xff] }
   0x6   :  { %1171 = vmatprep.subr.bf16.mxu0 %v1170_v5  ;;  %v1198_v19 = vpack.c.bf16 %v228_v16, %v227_v15  ;;  %v1202_v20 = vpack.c.bf16 %v230_v18, %v229_v17 }
   0x9   :  { %1173 = vmatpush3.bf16.msra.mxu0 %v1170_v5 }
   0xa   :  { %1175 = vmatprep.subr.bf16.mxu0 %v1174_v8 }
   0xd   :  { %1177 = vmatpush3.bf16.msra.mxu0 %v1174_v8 }
   0xe   :  { %12 = vsyncpa [#allocation3], 0  ;;  %1179 = vmatprep.subr.bf16.mxu0 %v1178_v12  ;;  %v1182_v21 = vpack.c.bf16 %v52_v14, %v51_v13  ;;  %v231_v22 = vld [vmem:[%s1574_s5 + $0x20] sm:$0xff]  ;;  %v232_v23 = vld [vmem:[%s1574_s5 + $0x28] sm:$0xff]  ;;  %1199 = vmatprep.subr.bf16.mxu1 %v1198_v19  ;;  %v1245_v53 = vmov 0   ;;  %vm242_vm0 = vcmask 523264  }
   0xf   :  { %v53_v24 = vld [vmem:[%s1572_s3 + $0x50] sm:$0xff]  ;;  %v54_v25 = vld [vmem:[%s1572_s3 + $0x58] sm:$0xff]  ;;  %1201 = vmatpush3.bf16.msra.mxu1 %v1198_v19  ;;  %v1206_v26 = vpack.c.bf16 %v232_v23, %v231_v22  ;;  %v55_v28 = vld [vmem:[%s1572_s3 + $0x60] sm:$0xff]  ;;  %1217 = vset.pattern.permute.xlu1 %v1245_v53  ;;  %vm650_vm1 = vcmask 261120   ;;  %vm880_vm2 = vcmask 130112   ;;  %vm887_vm3 = vcmask 195712  }
  0x10   :  { %1203 = vmatprep.subr.bf16.mxu1 %v1202_v20  ;;  %v1186_v27 = vpack.c.bf16 %v54_v25, %v53_v24  ;;  %v56_v29 = vld [vmem:[%s1572_s3 + $0x68] sm:$0xff]  ;;  %v57_v31 = vld [vmem:[%s1572_s3 + $0x70] sm:$0xff]  ;;  %v58_v32 = vld [vmem:[%s1572_s3 + $0x78] sm:$0xff]  ;;  %1218 = vset.pattern.permute.xlu0 %v1245_v53  ;;  %vm894_vm4 = vcmask 261312   ;;  %vm901_vm5 = vcmask 326912   ;;  %vm908_vm6 = vcmask 392512  }
  0x11   :  { %1181 = vmatpush3.bf16.msra.mxu0 %v1178_v12  ;;  %v1190_v30 = vpack.c.bf16 %v56_v29, %v55_v28  ;;  %v1194_v33 = vpack.c.bf16 %v58_v32, %v57_v31  ;;  %v28_v34 = vld [vmem:[%s1569_s0 + $0x8] sm:$0xff]  ;;  %v29_v35 = vld [vmem:[%s1569_s0 + $0x10] sm:$0xff]  ;;  %v30_v36 = vld [vmem:[%s1569_s0 + $0x18] sm:$0xff]  ;;  %vm915_vm7 = vcmask 458112   ;;  %vm922_vm8 = vcmask 523712  }
  0x12   :  { %1183 = vmatprep.subr.bf16.mxu0 %v1182_v21  ;;  %v31_v37 = vld [vmem:[%s1569_s0 + $0x20] sm:$0xff]  ;;  %v32_v38 = vld [vmem:[%s1569_s0 + $0x28] sm:$0xff]  ;;  %v33_v39 = vld [vmem:[%s1569_s0 + $0x30] sm:$0xff]  ;;  %vm929_vm9 = vcmask 589312   ;;  %vm936_vm10 = vcmask 654912   ;;  %vm943_vm11 = vcmask 720512  }
  0x13   :  { %1205 = vmatpush3.bf16.msra.mxu1 %v1202_v20  ;;  %v34_v40 = vld [vmem:[%s1569_s0 + $0x38] sm:$0xff]  ;;  %v35_v41 = vld [vmem:[%s1569_s0 + $0x40] sm:$0xff]  ;;  %v36_v42 = vld [vmem:[%s1569_s0 + $0x48] sm:$0xff]  ;;  %vm950_vm12 = vcmask 786112   ;;  %vm957_vm13 = vcmask 851712   ;;  %vm964_vm14 = vcmask 917312  }
  0x14   :  { %1207 = vmatprep.subr.bf16.mxu1 %v1206_v26  ;;  %v37_v43 = vld [vmem:[%s1569_s0 + $0x50] sm:$0xff]  ;;  %v38_v44 = vld [vmem:[%s1569_s0 + $0x58] sm:$0xff]  ;;  %v39_v45 = vld [vmem:[%s1569_s0 + $0x60] sm:$0xff]  ;;  %vm971_vm15 = vcmask 982912  }
  0x15   :  { %1185 = vmatpush3.bf16.msra.mxu0 %v1182_v21  ;;  %v40_v46 = vld [vmem:[%s1569_s0 + $0x68] sm:$0xff]  ;;  %v41_v47 = vld [vmem:[%s1569_s0 + $0x70] sm:$0xff]  ;;  %v42_v48 = vld [vmem:[%s1569_s0 + $0x78] sm:$0xff] }
  0x16   :  { %1187 = vmatprep.subr.bf16.mxu0 %v1186_v27  ;;  %v233_v49 = vld [vmem:[%s1574_s5 + $0x30] sm:$0xff]  ;;  %v234_v50 = vld [vmem:[%s1574_s5 + $0x38] sm:$0xff]  ;;  %v699_v52 = vld [vmem:[%s1571_s2] sm:$0xff] }
  0x17   :  { %1209 = vmatpush3.bf16.msra.mxu1 %v1206_v26  ;;  %v1210_v51 = vpack.c.bf16 %v234_v50, %v233_v49  ;;  %703 = vperm.xlu1 %1217, %v699_v52   ;;  %v996_v54 = vld [vmem:[%s1573_s4] ss:$0 sm:$0xff] }
  0x18   :  { %v1448_v52 = vld [vmem:[%s1575_s6] ss:$0 sm:$0xff] }
  0x19   :  { %1189 = vmatpush3.bf16.msra.mxu0 %v1186_v27  ;;  %1211 = vmatprep.subr.bf16.mxu1 %v1210_v51 }
  0x1a   :  { %1191 = vmatprep.subr.bf16.mxu0 %v1190_v30 }
  0x1b   :  { %1213 = vmatpush3.bf16.msra.mxu1 %v1210_v51 }
  0x1d   :  { %1193 = vmatpush3.bf16.msra.mxu0 %v1190_v30 }
  0x1e   :  { %1195 = vmatprep.subr.bf16.mxu0 %v1194_v33 }
  0x21   :  { %1197 = vmatpush3.bf16.msra.mxu0 %v1194_v33 }
  0x24   :  { %1103 = vmatmul.mubr.f32.vlgmr.msra.gmra.mrb[0].mxu0 %v28_v34 }
  0x25   :  { %1105 = vmatprep.mubr.f32.mxu0 %v29_v35 }
  0x28   :  { %1106 = vmatmul.mubr.f32.gmra.mrb[2].mxu0 %v30_v36 }
  0x29   :  { %1108 = vmatprep.mubr.f32.mxu0 %v31_v37 }
  0x2c   :  { %1109 = vmatmul.mubr.f32.gmra.mrb[4].mxu0 %v32_v38 }
  0x2d   :  { %1111 = vmatprep.mubr.f32.mxu0 %v33_v39  ;;  %v1246_v39 = vmov 1966171168  }
  0x30   :  { %1112 = vmatmul.mubr.f32.gmra.mrb[6].mxu0 %v34_v40  ;;  %v458_v40 = vunpack.c.l.s4 %v1246_v39 }
  0x31   :  { %1114 = vmatprep.mubr.f32.mxu0 %v35_v41  ;;  %v460_v41 = vlaneseq }
  0x34   :  { %1115 = vmatmul.mubr.f32.gmra.mrb[8].mxu0 %v36_v42  ;;  %v459_v42 = vunpack.c.0.s8 %v458_v40 }
  0x35   :  { %1117 = vmatprep.mubr.f32.mxu0 %v37_v43  ;;  %v1431_v43 = vshrl.u32 %v460_v41, 7 }
  0x37   :  { %v1442_v50 = vsub.s32 0, %v1431_v43 }
  0x38   :  { %1118 = vmatmul.mubr.f32.gmra.mrb[10].mxu0 %v38_v44  ;;  %v1434_v44 = vsub.s32 %v459_v42, %v1431_v43 }
  0x39   :  { %1120 = vmatprep.mubr.f32.mxu0 %v39_v45  ;;  %v452_v45 = vld [vmem:[%s1570_s1] sm:$0xff] }
  0x3c   :  { %1121 = vmatmul.mubr.f32.gmra.mrb[12].mxu0 %v40_v46  ;;  %v463_v46 = vrot.slane %v452_v45, %v1434_v44 }
  0x3d   :  { %1123 = vmatprep.mubr.f32.mxu0 %v41_v47 }
  0x3e   :  { %v471_v47 = vcombine.high %v463_v46, %v463_v46  ;;  %v479_v53 = vrot.slane %v463_v46, %v1434_v44 }
  0x40   :  { %1124 = vmatmul.mubr.f32.gmra.mrb[14].mxu0 %v42_v48  ;;  %v456_v48 = vcombine.high %v452_v45, %v452_v45  ;;  %v493_v49 = vrot.slane %v471_v47, %v1434_v44 }
  0x42   :  { %v470_v51 = vrot.slane %v456_v48, %v1434_v44 }
  0xf7   :  { %v1104_v55 = vpop.f32.mrb[0].mxu0 }
  0xf8   :  { %v138_v56 = vadd.f32 %v1104_v55, %v996_v54  ;;  %v132_v57 = vpop.f32.mrb[1].mxu0 }
  0xf9   :  { %v133_v58 = vadd.f32 %v996_v54, %v132_v57  ;;  %v561_v57 = vrot.slane %v493_v49, %v1442_v50 }
  0xfa   :  { %v212_v61 = vmax.f32 %v138_v56, 0.0 }
  0xfb   :  { %v211_v59 = vmax.f32 %v133_v58, 0.0  ;;  %v1107_v60 = vpop.f32.mrb[2].mxu0  ;;  %v503_v58 = vcombine.high %v493_v49, %v493_v49 }
  0xfc   :  { %v148_v62 = vadd.f32 %v1107_v60, %v996_v54  ;;  %v142_v63 = vpop.f32.mrb[3].mxu0 }
  0xfd   :  { %v143_v0 = vadd.f32 %v996_v54, %v142_v63  ;;  %1142 = vmatprep.mubr.msk.f32.mxu1 %vm242_vm0, %v211_v59  ;;  %v472_v59 = vcombine.high %v470_v51, %v470_v51  ;;  %v501_v63 = vcombine.high %v479_v53, %v479_v53 }
  0xfe   :  { %1143 = vmatmul.mubr.msk.f32.vlgmr.msra.gmra.mrb[0].mxu1 %vm242_vm0, %v212_v61  ;;  %v214_v3 = vmax.f32 %v148_v62, 0.0  ;;  %v557_v62 = vrot.slane %v479_v53, %v1442_v50 }
  0xff   :  { %v213_v1 = vmax.f32 %v143_v0, 0.0  ;;  %v1110_v2 = vpop.f32.mrb[4].mxu0  ;;  %v453_v0 = vld [vmem:[%s1570_s1 + $0x8] sm:$0xff] }
 0x100   :  { %v158_v4 = vadd.f32 %v1110_v2, %v996_v54  ;;  %v152_v5 = vpop.f32.mrb[5].mxu0 }
 0x101   :  { %v153_v6 = vadd.f32 %v996_v54, %v152_v5  ;;  %1145 = vmatprep.mubr.msk.f32.mxu1 %vm242_vm0, %v213_v1 }
 0x102   :  { %1146 = vmatmul.mubr.msk.f32.gmra.mrb[2].mxu1 %vm242_vm0, %v214_v3  ;;  %v216_v9 = vmax.f32 %v158_v4, 0.0 }
 0x103   :  { %v215_v7 = vmax.f32 %v153_v6, 0.0  ;;  %v1113_v8 = vpop.f32.mrb[6].mxu0  ;;  %v569_v6 = vrot.slane %v503_v58, %v1442_v50 }
 0x104   :  { %v168_v10 = vadd.f32 %v1113_v8, %v996_v54  ;;  %v162_v11 = vpop.f32.mrb[7].mxu0 }
 0x105   :  { %v163_v12 = vadd.f32 %v996_v54, %v162_v11  ;;  %1148 = vmatprep.mubr.msk.f32.mxu1 %vm242_vm0, %v215_v7  ;;  %v500_v7 = vrot.slane %v472_v59, %v1434_v44 }
 0x106   :  { %v218_v13 = vmax.f32 %v168_v10, 0.0  ;;  %1149 = vmatmul.mubr.msk.f32.gmra.mrb[4].mxu1 %vm242_vm0, %v216_v9  ;;  %v486_v9 = vrot.slane %v470_v51, %v1434_v44  ;;  %v512_v10 = vrot.slane %v453_v0, %v1434_v44 }
 0x107   :  { %v217_v14 = vmax.f32 %v163_v12, 0.0  ;;  %v1116_v15 = vpop.f32.mrb[8].mxu0 }
 0x108   :  { %v178_v16 = vadd.f32 %v1116_v15, %v996_v54  ;;  %v172_v17 = vpop.f32.mrb[9].mxu0 }
 0x109   :  { %1151 = vmatprep.mubr.msk.f32.mxu1 %vm242_vm0, %v217_v14  ;;  %v173_v18 = vadd.f32 %v996_v54, %v172_v17  ;;  %v565_v14 = vrot.slane %v501_v63, %v1442_v50 }
 0x10a   :  { %v220_v19 = vmax.f32 %v178_v16, 0.0  ;;  %1152 = vmatmul.mubr.msk.f32.gmra.mrb[6].mxu1 %vm242_vm0, %v218_v13 }
 0x10b   :  { %v219_v20 = vmax.f32 %v173_v18, 0.0  ;;  %v1119_v21 = vpop.f32.mrb[10].mxu0 }
 0x10c   :  { %v188_v22 = vadd.f32 %v1119_v21, %v996_v54  ;;  %v182_v23 = vpop.f32.mrb[11].mxu0  ;;  %v504_v21 = vcombine.high %v500_v7, %v500_v7 }
 0x10d   :  { %1154 = vmatprep.mubr.msk.f32.mxu1 %vm242_vm0, %v219_v20  ;;  %v183_v24 = vadd.f32 %v996_v54, %v182_v23  ;;  %v577_v20 = vrot.slane %v500_v7, %v1442_v50  ;;  %v573_v23 = vrot.slane %v486_v9, %v1442_v50 }
 0x10e   :  { %v222_v25 = vmax.f32 %v188_v22, 0.0  ;;  %1155 = vmatmul.mubr.msk.f32.gmra.mrb[8].mxu1 %vm242_vm0, %v220_v19 }
 0x10f   :  { %v221_v26 = vmax.f32 %v183_v24, 0.0  ;;  %v1122_v27 = vpop.f32.mrb[12].mxu0  ;;  %v520_v24 = vcombine.high %v512_v10, %v512_v10 }
 0x110   :  { %v198_v28 = vadd.f32 %v1122_v27, %v996_v54  ;;  %v192_v29 = vpop.f32.mrb[13].mxu0 }
 0x111   :  { %v193_v30 = vadd.f32 %v996_v54, %v192_v29  ;;  %1157 = vmatprep.mubr.msk.f32.mxu1 %vm242_vm0, %v221_v26 }
 0x112   :  { %v224_v31 = vmax.f32 %v198_v28, 0.0  ;;  %1158 = vmatmul.mubr.msk.f32.gmra.mrb[10].mxu1 %vm242_vm0, %v222_v25  ;;  %v505_v25 = vcombine.high %v453_v0, %v453_v0 }
 0x113   :  { %v223_v32 = vmax.f32 %v193_v30, 0.0  ;;  %v1125_v33 = vpop.f32.mrb[14].mxu0 }
 0x114   :  { %v208_v34 = vadd.f32 %v1125_v33, %v996_v54  ;;  %v202_v35 = vpop.f32.mrb[15].mxu0  ;;  %v519_v45 = vrot.slane %v505_v25, %v1434_v44 }
 0x115   :  { %1160 = vmatprep.mubr.msk.f32.mxu1 %vm242_vm0, %v223_v32  ;;  %v203_v36 = vadd.f32 %v996_v54, %v202_v35  ;;  %v502_v32 = vcombine.high %v486_v9, %v486_v9  ;;  %v585_v35 = vrot.slane %v504_v21, %v1442_v50 }
 0x116   :  { %1161 = vmatmul.mubr.msk.f32.gmra.mrb[12].mxu1 %vm242_vm0, %v224_v31  ;;  %v226_v37 = vmax.f32 %v208_v34, 0.0 }
 0x117   :  { %v225_v38 = vmax.f32 %v203_v36, 0.0  ;;  %v581_v49 = vrot.slane %v502_v32, %v1442_v50 }
 0x119   :  { %1163 = vmatprep.mubr.msk.f32.mxu1 %vm242_vm0, %v225_v38  ;;  %v542_v38 = vrot.slane %v520_v24, %v1434_v44 }
 0x11a   :  { %1164 = vmatmul.mubr.msk.f32.gmra.mrb[14].mxu1 %vm242_vm0, %v226_v37  ;;  %vm978_vm0 = vcmask 1048512  }
 0x11b   :  { %v593_v0 = vrot.slane %v542_v38, %v1442_v50 }
 0x1d1   :  { %v1144_v54 = vpop.f32.mrb[0].mxu1 }
 0x1d2   :  { %v363_v55 = vadd.f32 %v1144_v54, %v1448_v52  ;;  %v357_v56 = vpop.f32.mrb[1].mxu1 }
 0x1d3   :  { %v358_v60 = vadd.f32 %v1448_v52, %v357_v56  ;;  %v528_v56 = vrot.slane %v512_v10, %v1434_v44 }
 0x1d4   :  { %v437_v61 = vmax.f32 %v363_v55, 0.0  ;;  %v552_v55 = vcombine.high %v542_v38, %v542_v38 }
 0x1d5   :  { %v436_v1 = vmax.f32 %v358_v60, 0.0  ;;  %v1147_v2 = vpop.f32.mrb[2].mxu1  ;;  %v521_v60 = vcombine.high %v519_v45, %v519_v45  ;;  %v550_v7 = vcombine.high %v528_v56, %v528_v56 }
 0x1d6   :  { %v373_v3 = vadd.f32 %v1147_v2, %v1448_v52  ;;  %v367_v4 = vpop.f32.mrb[3].mxu1  ;;  %v635_v5 = vmul.f32 %v561_v57, %v437_v61 }
 0x1d7   :  { %v368_v8 = vadd.f32 %v1448_v52, %v367_v4  ;;  %v634_v13 = vmul.f32 %v557_v62, %v436_v1  ;;  %v589_v4 = vrot.slane %v528_v56, %v1442_v50 }
 0x1d8   :  { %v439_v11 = vmax.f32 %v373_v3, 0.0  ;;  %v654_v12 = vsel %vm650_vm1, %v635_v5, 0.0  ;;  %v601_v3 = vrot.slane %v552_v55, %v1442_v50 }
 0x1d9   :  { %v438_v15 = vmax.f32 %v368_v8, 0.0  ;;  %655 = vadd.xlane.f32.xlu0 %v654_v12  ;;  %v1150_v16 = vpop.f32.mrb[4].mxu1  ;;  %v651_v28 = vsel %vm650_vm1, %v634_v13, 0.0  ;;  %v549_v8 = vrot.slane %v521_v60, %v1434_v44  ;;  %v535_v13 = vrot.slane %v519_v45, %v1434_v44 }
 0x1da   :  { %v383_v17 = vadd.f32 %v1150_v16, %v1448_v52  ;;  %v377_v18 = vpop.f32.mrb[5].mxu1  ;;  %v637_v19 = vmul.f32 %v569_v6, %v439_v11 }
 0x1db   :  { %v378_v22 = vadd.f32 %v1448_v52, %v377_v18  ;;  %v636_v29 = vmul.f32 %v565_v14, %v438_v15  ;;  %v551_v16 = vcombine.high %v535_v13, %v535_v13  ;;  %v605_v38 = vrot.slane %v535_v13, %v1442_v50 }
 0x1dc   :  { %v441_v26 = vmax.f32 %v383_v17, 0.0  ;;  %v660_v27 = vsel %vm650_vm1, %v637_v19, 0.0  ;;  %v553_v17 = vcombine.high %v549_v8, %v549_v8 }
 0x1dd   :  { %v440_v30 = vmax.f32 %v378_v22, 0.0  ;;  %661 = vadd.xlane.f32.xlu1 %v660_v27  ;;  %v1153_v31 = vpop.f32.mrb[6].mxu1  ;;  %652 = vadd.xlane.f32.xlu0 %v651_v28  ;;  %v657_v40 = vsel %vm650_vm1, %v636_v29, 0.0  ;;  %v613_v27 = vrot.slane %v551_v16, %v1442_v50 }
 0x1de   :  { %v393_v33 = vadd.f32 %v1153_v31, %v1448_v52  ;;  %v387_v34 = vpop.f32.mrb[7].mxu1  ;;  %v639_v42 = vmul.f32 %v577_v20, %v441_v26  ;;  %v617_v28 = vrot.slane %v553_v17, %v1442_v50 }
 0x1df   :  { %v388_v36 = vadd.f32 %v1448_v52, %v387_v34  ;;  %v638_v37 = vmul.f32 %v573_v23, %v440_v30  ;;  %v597_v23 = vrot.slane %v550_v7, %v1442_v50  ;;  %v609_v30 = vrot.slane %v549_v8, %v1442_v50 }
 0x1e0   :  { %v443_v39 = vmax.f32 %v393_v33, 0.0  ;;  %v666_v58 = vsel %vm650_vm1, %v639_v42, 0.0 }
 0x1e1   :  { %v442_v46 = vmax.f32 %v388_v36, 0.0  ;;  %658 = vadd.xlane.f32.xlu1 %v657_v40  ;;  %v663_v47 = vsel %vm650_vm1, %v638_v37, 0.0  ;;  %v1156_v48 = vpop.f32.mrb[8].mxu1 }
 0x1e2   :  { %664 = vadd.xlane.f32.xlu0 %v663_v47  ;;  %v403_v51 = vadd.f32 %v1156_v48, %v1448_v52  ;;  %v397_v53 = vpop.f32.mrb[9].mxu1  ;;  %v641_v54 = vmul.f32 %v585_v35, %v443_v39 }
 0x1e3   :  { %v398_v57 = vadd.f32 %v1448_v52, %v397_v53  ;;  %v640_v63 = vmul.f32 %v581_v49, %v442_v46  ;;  %v700_v49 = vld [vmem:[%s1571_s2 + $0x8] sm:$0xff]  ;;  %v704_v53 = vpop.permute.xlu1 %703  ;;  %s1247_s2 = smov [#allocation2]  }
 0x1e4   :  { %v672_v59 = vsel %vm650_vm1, %v641_v54, 0.0  ;;  %v445_v61 = vmax.f32 %v403_v51, 0.0  ;;  %v715_v51 = vsub.s32 1, %v1431_v43  ;;  %s988_s17 = sshll.u32 %s1247_s2, 4  ;;  %s989_s17 = int_to_ptr.vmem [resolvable:$true] %s988_s17 }
 0x1e5   :  { %667 = vadd.xlane.f32.xlu1 %v666_v58  ;;  %v1159_v62 = vpop.f32.mrb[10].mxu1  ;;  %v444_v5 = vmax.f32 %v398_v57, 0.0  ;;  %v669_v9 = vsel %vm650_vm1, %v640_v63, 0.0  ;;  %v723_v57 = vsub.s32 3, %v1431_v43  ;;  %v712_v58 = vrot.slane %v704_v53, %v1442_v50  ;;  %s1221_s18 = scalar_lea.vmem %s989_s17, 16  ;;  %s1225_s19 = scalar_lea.vmem %s989_s17, 32 }
 0x1e6   :  { %673 = vadd.xlane.f32.xlu0 %v672_v59  ;;  %v413_v1 = vadd.f32 %v1159_v62, %v1448_v52  ;;  %v407_v2 = vpop.f32.mrb[11].mxu1  ;;  %v643_v11 = vmul.f32 %v593_v0, %v445_v61  ;;  %v716_v54 = vrot.slane %v704_v53, %v715_v51  ;;  %v719_v59 = vsub.s32 2, %v1431_v43  ;;  %p1222_p0 = scmp.ne.s32.totalorder %s989_s17, %s1221_s18  ;;  %p1226_p1 = scmp.lt.s32.totalorder %s989_s17, %s989_s17 }
 0x1e7   :  { %v408_v10 = vadd.f32 %v1448_v52, %v407_v2  ;;  %v642_v18 = vmul.f32 %v589_v4, %v444_v5  ;;  %v724_v63 = vrot.slane %v704_v53, %v723_v57  ;;  %v731_v2 = vsub.s32 5, %v1431_v43  ;;  %p1227_p2 = scmp.lt.s32.totalorder %s1225_s19, %s1221_s18 }
 0x1e8   :  { %v447_v6 = vmax.f32 %v413_v1, 0.0  ;;  %v678_v21 = vsel %vm650_vm1, %v643_v11, 0.0  ;;  %v720_v0 = vrot.slane %v704_v53, %v719_v59  ;;  %v727_v1 = vsub.s32 4, %v1431_v43 }
 0x1e9   :  { %v1162_v12 = vpop.f32.mrb[12].mxu1  ;;  %v446_v20 = vmax.f32 %v408_v10, 0.0  ;;  %v675_v29 = vsel %vm650_vm1, %v642_v18, 0.0  ;;  %v732_v8 = vrot.slane %v704_v53, %v731_v2  ;;  %v735_v11 = vsub.s32 6, %v1431_v43  ;;  %p1228_p3 = por %p1227_p2, %p1226_p1 }
 0x1ea   :  { %670 = vadd.xlane.f32.xlu0 %v669_v9  ;;  %v417_v14 = vpop.f32.mrb[13].mxu1  ;;  %v645_v15 = vmul.f32 %v601_v3, %v447_v6  ;;  %v423_v22 = vadd.f32 %v1162_v12, %v1448_v52  ;;  %v728_v7 = vrot.slane %v704_v53, %v727_v1  ;;  %v739_v9 = vsub.s32 7, %v1431_v43 }
 0x1eb   :  { %v418_v33 = vadd.f32 %v1448_v52, %v417_v14  ;;  %v644_v34 = vmul.f32 %v597_v23, %v446_v20  ;;  %v736_v16 = vrot.slane %v704_v53, %v735_v11  ;;  %p1229_p4 = pnand %p1228_p3, %p1222_p0 }
 0x1ec   :  { %v684_v19 = vsel %vm650_vm1, %v645_v15, 0.0  ;;  %v449_v32 = vmax.f32 %v423_v22, 0.0  ;;  %v740_v15 = vrot.slane %v704_v53, %v739_v9 }
 0x1ed   :  { %685 = vadd.xlane.f32.xlu1 %v684_v19  ;;  %v1165_v24 = vpop.f32.mrb[14].mxu1  ;;  %v448_v39 = vmax.f32 %v418_v33, 0.0  ;;  %v681_v40 = vsel %vm650_vm1, %v644_v34, 0.0 }
 0x1ee   :  { %679 = vadd.xlane.f32.xlu0 %v678_v21  ;;  %v433_v44 = vadd.f32 %v1165_v24, %v1448_v52  ;;  %v427_v25 = vpop.f32.mrb[15].mxu1  ;;  %v647_v42 = vmul.f32 %v609_v30, %v449_v32 }
 0x1ef   :  { %v428_v26 = vadd.f32 %v1448_v52, %v427_v25  ;;  %v646_v52 = vmul.f32 %v605_v38, %v448_v39 }
 0x1f0   :  { %v451_v31 = vmax.f32 %v433_v44, 0.0  ;;  %v690_v47 = vsel %vm650_vm1, %v647_v42, 0.0 }
 0x1f1   :  { %v450_v35 = vmax.f32 %v428_v26, 0.0  ;;  %v687_v48 = vsel %vm650_vm1, %v646_v52, 0.0 }
 0x1f2   :  { %676 = vadd.xlane.f32.xlu0 %v675_v29  ;;  %v649_v37 = vmul.f32 %v617_v28, %v451_v31 }
 0x1f3   :  { %v648_v36 = vmul.f32 %v613_v27, %v450_v35 }
 0x1f4   :  { %v696_v46 = vsel %vm650_vm1, %v649_v37, 0.0 }
 0x1f5   :  { %v693_v45 = vsel %vm650_vm1, %v648_v36, 0.0 }
 0x1f6   :  { %682 = vadd.xlane.f32.xlu0 %v681_v40  ;;  %694 = vadd.xlane.f32.xlu1 %v693_v45 }
 0x1fa   :  { %691 = vadd.xlane.f32.xlu0 %v690_v47  ;;  %697 = vadd.xlane.f32.xlu1 %v696_v46  ;;  %v1523_v46 = vand.u32 127, %v460_v41 }
 0x1fc   :  { %v873_v53 = vsub.s32 %v1523_v46, %v1431_v43 }
 0x1fe   :  { %688 = vadd.xlane.f32.xlu0 %v687_v48  ;;  %v882_v48 = vadd.s32 4294967280, %v1523_v46 }
 0x214   :  { %707 = vperm.xlu0 %1218, %v700_v49   ;;  %v875_v49 = vadd.s32 4294967288, %v1523_v46 }
 0x266   :  { %v656_v55 = vpop.xlane.xlu0 %655 }
 0x267   :  { %v790_v56 = vadd.f32 %v716_v54, %v656_v55  ;;  %v889_v54 = vadd.s32 4294967272, %v1523_v46  ;;  %v885_v55 = vsub.s32 %v882_v48, %v1431_v43 }
 0x269   :  { %825 = vperm.xlu0 %1218, %v790_v56   ;;  %v896_v56 = vadd.s32 4294967264, %v1523_v46 }
 0x26a   :  { %v662_v60 = vpop.xlane.xlu1 %661  ;;  %v653_v61 = vpop.xlane.xlu0 %652 }
 0x26b   :  { %v789_v62 = vadd.f32 %v712_v58, %v653_v61  ;;  %v792_v4 = vadd.f32 %v724_v63, %v662_v60  ;;  %v903_v60 = vadd.s32 4294967256, %v1523_v46  ;;  %v899_v63 = vsub.s32 %v896_v56, %v1431_v43 }
 0x26d   :  { %822 = vperm.xlu1 %1217, %v789_v62  }
 0x26e   :  { %v659_v3 = vpop.xlane.xlu1 %658 }
 0x26f   :  { %v791_v5 = vadd.f32 %v720_v0, %v659_v3  ;;  %v665_v6 = vpop.xlane.xlu0 %664  ;;  %v910_v0 = vadd.s32 4294967248, %v1523_v46 }
 0x270   :  { %v793_v12 = vadd.f32 %v728_v7, %v665_v6 }
 0x271   :  { %828 = vperm.xlu0 %1218, %v791_v5   ;;  %831 = vperm.xlu1 %1217, %v792_v4   ;;  %v906_v4 = vsub.s32 %v903_v60, %v1431_v43 }
 0x272   :  { %v668_v10 = vpop.xlane.xlu1 %667 }
 0x273   :  { %v794_v13 = vadd.f32 %v732_v8, %v668_v10  ;;  %v674_v14 = vpop.xlane.xlu0 %673  ;;  %v913_v8 = vsub.s32 %v910_v0, %v1431_v43 }
 0x274   :  { %v796_v17 = vadd.f32 %v740_v15, %v674_v14  ;;  %v931_v14 = vadd.s32 4294967224, %v1523_v46 }
 0x275   :  { %837 = vperm.xlu1 %1217, %v794_v13   ;;  %834 = vperm.xlu0 %1218, %v793_v12  }
 0x277   :  { %v671_v18 = vpop.xlane.xlu0 %670 }
 0x278   :  { %v795_v19 = vadd.f32 %v736_v16, %v671_v18 }
 0x279   :  { %843 = vperm.xlu1 %1217, %v796_v17  }
 0x27a   :  { %840 = vperm.xlu0 %1218, %v795_v19   ;;  %v686_v27 = vpop.xlane.xlu1 %685 }
 0x27b   :  { %v680_v20 = vpop.xlane.xlu0 %679 }
 0x27f   :  { %v677_v21 = vpop.xlane.xlu0 %676 }
 0x283   :  { %v683_v22 = vpop.xlane.xlu0 %682  ;;  %v695_v32 = vpop.xlane.xlu1 %694 }
 0x287   :  { %v692_v23 = vpop.xlane.xlu0 %691  ;;  %v698_v42 = vpop.xlane.xlu1 %697 }
 0x28b   :  { %v689_v24 = vpop.xlane.xlu0 %688 }
 0x293   :  { %v708_v44 = vpop.permute.xlu0 %707 }
 0x294   :  { %v748_v25 = vrot.slane %v708_v44, %v715_v51  ;;  %v744_v26 = vrot.slane %v708_v44, %v1442_v50  ;;  %v756_v30 = vrot.slane %v708_v44, %v723_v57  ;;  %v752_v31 = vrot.slane %v708_v44, %v719_v59 }
 0x295   :  { %v764_v35 = vrot.slane %v708_v44, %v731_v2  ;;  %v760_v36 = vrot.slane %v708_v44, %v727_v1  ;;  %v772_v37 = vrot.slane %v708_v44, %v739_v9  ;;  %v768_v40 = vrot.slane %v708_v44, %v735_v11 }
 0x296   :  { %v798_v28 = vadd.f32 %v748_v25, %v680_v20  ;;  %v797_v29 = vadd.f32 %v744_v26, %v677_v21  ;;  %v800_v33 = vadd.f32 %v756_v30, %v686_v27  ;;  %v799_v34 = vadd.f32 %v752_v31, %v683_v22 }
 0x297   :  { %v802_v38 = vadd.f32 %v764_v35, %v692_v23  ;;  %v801_v39 = vadd.f32 %v760_v36, %v689_v24  ;;  %v804_v50 = vadd.f32 %v772_v37, %v698_v42  ;;  %v803_v45 = vadd.f32 %v768_v40, %v695_v32 }
 0x298   :  { %849 = vperm.xlu1 %1217, %v798_v28   ;;  %846 = vperm.xlu0 %1218, %v797_v29   ;;  %v878_v57 = vsub.s32 %v875_v49, %v1431_v43  ;;  %v892_v59 = vsub.s32 %v889_v54, %v1431_v43  ;;  %v917_v9 = vadd.s32 4294967240, %v1523_v46  ;;  %v924_v11 = vadd.s32 4294967232, %v1523_v46 }
 0x299   :  { %v938_v20 = vadd.s32 4294967216, %v1523_v46  ;;  %v934_v22 = vsub.s32 %v931_v14, %v1431_v43  ;;  %v945_v23 = vadd.s32 4294967208, %v1523_v46  ;;  %v952_v29 = vadd.s32 4294967200, %v1523_v46 }
 0x29a   :  { %v920_v17 = vsub.s32 %v917_v9, %v1431_v43  ;;  %v927_v19 = vsub.s32 %v924_v11, %v1431_v43  ;;  %v966_v40 = vadd.s32 4294967184, %v1523_v46 }
 0x29b   :  { %v941_v28 = vsub.s32 %v938_v20, %v1431_v43  ;;  %v948_v32 = vsub.s32 %v945_v23, %v1431_v43 }
 0x29c   :  { %855 = vperm.xlu1 %1217, %v800_v33   ;;  %852 = vperm.xlu0 %1218, %v799_v34   ;;  %v959_v33 = vadd.s32 4294967192, %v1523_v46 }
 0x2a0   :  { %861 = vperm.xlu1 %1217, %v802_v38   ;;  %858 = vperm.xlu0 %1218, %v801_v39   ;;  %v955_v38 = vsub.s32 %v952_v29, %v1431_v43  ;;  %v973_v39 = vadd.s32 4294967176, %v1523_v46 }
 0x2a4   :  { %867 = vperm.xlu1 %1217, %v804_v50   ;;  %864 = vperm.xlu0 %1218, %v803_v45   ;;  %v962_v45 = vsub.s32 %v959_v33, %v1431_v43 }
 0x2e8   :  { %v826_v47 = vpop.permute.xlu0 %825 }
 0x2e9   :  { %v879_v1 = vrot.slane %v826_v47, %v878_v57 }
 0x2ec   :  { %v823_v52 = vpop.permute.xlu1 %822 }
 0x2ed   :  { %v874_v58 = vrot.slane %v823_v52, %v873_v53  ;;  %v969_v53 = vsub.s32 %v966_v40, %v1431_v43 }
 0x2ef   :  { %v881_v2 = vsel %vm880_vm2, %v879_v1, %v874_v58 }
 0x2f0   :  { %v829_v51 = vpop.permute.xlu0 %828  ;;  %v832_v41 = vpop.permute.xlu1 %831 }
 0x2f1   :  { %v886_v62 = vrot.slane %v829_v51, %v885_v55  ;;  %v893_v3 = vrot.slane %v832_v41, %v892_v59  ;;  %v976_v51 = vsub.s32 %v973_v39, %v1431_v43 }
 0x2f3   :  { %v888_v6 = vsel %vm887_vm3, %v886_v62, %v881_v2 }
 0x2f4   :  { %v835_v61 = vpop.permute.xlu0 %834  ;;  %v838_v5 = vpop.permute.xlu1 %837  ;;  %v895_v13 = vsel %vm894_vm4, %v893_v3, %v888_v6 }
 0x2f5   :  { %v900_v7 = vrot.slane %v835_v61, %v899_v63  ;;  %v907_v12 = vrot.slane %v838_v5, %v906_v4 }
 0x2f7   :  { %v902_v15 = vsel %vm901_vm5, %v900_v7, %v895_v13 }
 0x2f8   :  { %v844_v18 = vpop.permute.xlu1 %843  ;;  %v909_v21 = vsel %vm908_vm6, %v907_v12, %v902_v15 }
 0x2f9   :  { %v841_v10 = vpop.permute.xlu0 %840  ;;  %v921_v44 = vrot.slane %v844_v18, %v920_v17 }
 0x2fa   :  { %v914_v16 = vrot.slane %v841_v10, %v913_v8 }
 0x2fc   :  { %v916_v24 = vsel %vm915_vm7, %v914_v16, %v909_v21 }
 0x2fd   :  { %v923_v31 = vsel %vm922_vm8, %v921_v44, %v916_v24 }
 0x317   :  { %v850_v25 = vpop.permute.xlu1 %849  ;;  %v847_v26 = vpop.permute.xlu0 %846 }
 0x318   :  { %v928_v27 = vrot.slane %v847_v26, %v927_v19  ;;  %v935_v30 = vrot.slane %v850_v25, %v934_v22 }
 0x31a   :  { %v930_v34 = vsel %vm929_vm9, %v928_v27, %v923_v31 }
 0x31b   :  { %v856_v35 = vpop.permute.xlu1 %855  ;;  %v853_v36 = vpop.permute.xlu0 %852  ;;  %v937_v50 = vsel %vm936_vm10, %v935_v30, %v930_v34 }
 0x31c   :  { %v942_v37 = vrot.slane %v853_v36, %v941_v28  ;;  %v949_v42 = vrot.slane %v856_v35, %v948_v32 }
 0x31e   :  { %v944_v47 = vsel %vm943_vm11, %v942_v37, %v937_v50 }
 0x31f   :  { %v862_v52 = vpop.permute.xlu1 %861  ;;  %v859_v48 = vpop.permute.xlu0 %858  ;;  %v951_v55 = vsel %vm950_vm12, %v949_v42, %v944_v47 }
 0x320   :  { %v956_v49 = vrot.slane %v859_v48, %v955_v38  ;;  %v963_v54 = vrot.slane %v862_v52, %v962_v45 }
 0x322   :  { %v958_v56 = vsel %vm957_vm13, %v956_v49, %v951_v55 }
 0x323   :  { %v868_v57 = vpop.permute.xlu1 %867  ;;  %v865_v46 = vpop.permute.xlu0 %864  ;;  %v965_v59 = vsel %vm964_vm14, %v963_v54, %v958_v56 }
 0x324   :  { %v977_v41 = vrot.slane %v868_v57, %v976_v51  ;;  %v970_v58 = vrot.slane %v865_v46, %v969_v53 }
 0x326   :  { %v972_v60 = vsel %vm971_vm15, %v970_v58, %v965_v59 }
 0x327   :  { %v979_v61 = vsel %vm978_vm0, %v977_v41, %v972_v60 }
 0x328   :  { %981 = vst [vmem:[#allocation2] sm:$0x1] %v979_v61 }
 0x329   :  { %1232 = shalt.err (!%p1229_p4)
}
 0x32a   :  { %s1233_s22 = scalar_lea.hbm %s1576_s7, 16 }
 0x32b   :  { %p1234_p5 = scmp.ne.s32.totalorder %s1576_s7, %s1233_s22  ;;  %p1237_p6 = scmp.lt.u32.totalorder %s1233_s22, %s1576_s7 }
 0x32d   :  { %p1239_p7 = pnand %p1237_p6, %p1234_p5 }
 0x32f   :  { %1242 = shalt.err (!%p1239_p7)
}
 0x330   :  { %991 = dma.vmem_to_hbm [thread:$0]  %s989_s17, 16, %s1576_s7, [#allocation3]  }
 0x331   :  { %1243 = dma.done.wait [#allocation3], 16  }
 0x332   :  { %1244 = vsyncadd [#allocation3], 4294967280 }
 0x333   :  { %995 = vsyncpa [#allocation3], 1 }

</bundles_post_ra>
